<compile_context>
chip_gen: v7x
topology: tpu7x:2x2x1
jax: 0.10.0
libtpu: 0.0.40
codegen_flags: <defaults>
</compile_context>

<pallas_src>
import functools

import jax
import jax.numpy as jnp
from jax import lax
from jax.experimental import pallas as pl
from jax.experimental.pallas import tpu as pltpu

EPS = 1e-5                       # torch.nn.LayerNorm default
LANES = 128                      # TPU vreg lane width
MAX_ROW_TILE = 1024              # diminishing HBM-roofline returns beyond this
VMEM_TILE_BUDGET = 16 * 1024 * 1024   # budget for the double-buffered in+out tiles
VMEM_LIMIT = 32 * 1024 * 1024         # safe on v5e/v6e/v7x


def _cdiv(a, b):
    return -(-a // b)


def _round_up(a, b):
    return _cdiv(a, b) * b


def _choose_row_tile(n_rows, lane_dim, itemsize):
    """Largest sublane-aligned row tile whose pipelined working set fits VMEM."""
    pack = max(8, 32 // itemsize)              # 8 (f32) / 16 (bf16) / 32 (int8)
    per_row = 2 * lane_dim * (2 * itemsize)    # 2 buffers x (input + output)
    tile = max(pack, (VMEM_TILE_BUDGET // per_row) // pack * pack)
    tile = min(tile, MAX_ROW_TILE)
    tile = min(tile, _round_up(n_rows, pack))
    # v7x megacore: prefer >= 2 grid steps so both TensorCores get work.
    if n_rows >= 2 * pack and _cdiv(n_rows, tile) < 2:
        tile = _round_up(_cdiv(n_rows, 2), pack)
    return tile


def _layernorm_rows_kernel(x_ref, w_ref, b_ref, o_ref, *, inv_d):
    # Plain path: one LayerNorm row per tile row; D is the lane dimension.
    x = x_ref[...].astype(jnp.float32)
    s1 = jnp.sum(x, axis=-1, keepdims=True)
    s2 = jnp.sum(x * x, axis=-1, keepdims=True)
    mean = s1 * inv_d
    var = jnp.maximum(s2 * inv_d - mean * mean, 0.0)
    y = (x - mean) * lax.rsqrt(var + EPS)
    o_ref[...] = (y * w_ref[...] + b_ref[...]).astype(o_ref.dtype)


def _seg_sum(v, seg):
    # Segment sum along lanes via a 0/1 block-diagonal matmul (the MXU is idle
    # in this memory-bound kernel, so it is free).  The hi/lo split keeps the
    # result at ~f32 accuracy even if the MXU runs f32 operands as bf16 passes.
    v_hi = v.astype(jnp.bfloat16).astype(jnp.float32)
    v_lo = v - v_hi
    return (jnp.dot(v_hi, seg, preferred_element_type=jnp.float32)
            + jnp.dot(v_lo, seg, preferred_element_type=jnp.float32))


def _layernorm_packed_kernel(x_ref, seg_ref, w_ref, b_ref, o_ref, *, inv_d):
    # Lane-packed path: each tile row holds 128/D consecutive LayerNorm rows,
    # so VPU ops and the output store use full 128-lane vregs (no vst.msk).
    x = x_ref[...].astype(jnp.float32)
    seg = seg_ref[...]
    mean = _seg_sum(x, seg) * inv_d
    ex2 = _seg_sum(x * x, seg) * inv_d
    var = jnp.maximum(ex2 - mean * mean, 0.0)
    y = (x - mean) * lax.rsqrt(var + EPS)
    o_ref[...] = (y * w_ref[...] + b_ref[...]).astype(o_ref.dtype)


@jax.jit
def identity_norm_layer(x, weight, bias):
    """LayerNorm(x) over the last dim with elementwise affine (torch defaults).

    x: (N, D);  weight, bias: (D,).  Output has x's shape and dtype.
    """
    n, d = x.shape
    itemsize = jnp.dtype(x.dtype).itemsize
    w32 = weight.astype(jnp.float32)
    b32 = bias.astype(jnp.float32)

    compiler_params = pltpu.CompilerParams(
        dimension_semantics=("parallel",),
        vmem_limit_bytes=VMEM_LIMIT,
    )

    pack = LANES // d if (d < LANES and LANES % d == 0) else 1
    use_packed = pack > 1 and n % pack == 0

    if use_packed:
        n_rows, lane_dim = n // pack, pack * d
        x2 = x.reshape(n_rows, lane_dim)                    # contiguous: free reshape
        w2 = jnp.tile(w32, (pack,)).reshape(1, lane_dim)
        b2 = jnp.tile(b32, (pack,)).reshape(1, lane_dim)
        # 0/1 block-diagonal segment-sum matrix: lane j sums its own D-segment.
        lane = jnp.arange(lane_dim)
        seg = (lane[:, None] // d == lane[None, :] // d).astype(jnp.float32)

        tile = _choose_row_tile(n_rows, lane_dim, itemsize)
        grid = (_cdiv(n_rows, tile),)
        out = pl.pallas_call(
            functools.partial(_layernorm_packed_kernel, inv_d=1.0 / d),
            out_shape=jax.ShapeDtypeStruct((n_rows, lane_dim), x.dtype),
            grid_spec=pltpu.PrefetchScalarGridSpec(
                num_scalar_prefetch=0,
                grid=grid,
                in_specs=[
                    pl.BlockSpec((tile, lane_dim), lambda i: (i, 0)),
                    pl.BlockSpec((lane_dim, lane_dim), lambda i: (0, 0)),
                    pl.BlockSpec((1, lane_dim), lambda i: (0, 0)),
                    pl.BlockSpec((1, lane_dim), lambda i: (0, 0)),
                ],
                out_specs=pl.BlockSpec((tile, lane_dim), lambda i: (i, 0)),
            ),
            compiler_params=compiler_params,
        )(x2, seg, w2, b2)
        return out.reshape(n, d)

    # TODO(synk): D < 128 with N not divisible by 128//D falls back to this
    # narrow-lane path; a packed bulk call + small remainder call would keep
    # those shapes lane-dense too.
    w2 = w32.reshape(1, d)
    b2 = b32.reshape(1, d)
    tile = _choose_row_tile(n, d, itemsize)
    grid = (_cdiv(n, tile),)
    return pl.pallas_call(
        functools.partial(_layernorm_rows_kernel, inv_d=1.0 / d),
        out_shape=jax.ShapeDtypeStruct((n, d), x.dtype),
        grid_spec=pltpu.PrefetchScalarGridSpec(
            num_scalar_prefetch=0,
            grid=grid,
            in_specs=[
                pl.BlockSpec((tile, d), lambda i: (i, 0)),
                pl.BlockSpec((1, d), lambda i: (0, 0)),
                pl.BlockSpec((1, d), lambda i: (0, 0)),
            ],
            out_specs=pl.BlockSpec((tile, d), lambda i: (i, 0)),
        ),
        compiler_params=compiler_params,
    )(x, w2, b2)


def _layernorm_ref(x, w, b):
    xf = x.astype(jnp.float32)
    mean = jnp.mean(xf, axis=-1, keepdims=True)
    var = jnp.mean((xf - mean) ** 2, axis=-1, keepdims=True)
    y = (xf - mean) * lax.rsqrt(var + EPS) * w + b
    return y.astype(x.dtype)


if __name__ == "__main__":
    key = jax.random.PRNGKey(0)
    k1, k2, k3, k4 = jax.random.split(key, 4)

    # Small-D case (dim_out=32): exercises the lane-packed path (multi-step grid).
    N1, D1 = 64, 32
    x1 = jax.random.normal(k1, (N1, D1), dtype=jnp.float32)
    w1 = 1.0 + 0.1 * jax.random.normal(k2, (D1,), dtype=jnp.float32)
    b1 = 0.1 * jax.random.normal(k3, (D1,), dtype=jnp.float32)

    out1 = identity_norm_layer(x1, w1, b1)
    jax.block_until_ready(out1)
    ref1 = _layernorm_ref(x1, w1, b1)
    assert out1.shape == x1.shape and out1.dtype == x1.dtype
    assert jnp.allclose(out1, ref1, atol=1e-4, rtol=1e-4), "packed-path mismatch"

    # Wide-D, ragged-N case: exercises the row path + masked boundary block.
    N2, D2 = 24, 256
    x2 = jax.random.normal(k4, (N2, D2), dtype=jnp.float32)
    w2 = jnp.ones((D2,), dtype=jnp.float32)
    b2 = jnp.zeros((D2,), dtype=jnp.float32)

    out2 = identity_norm_layer(x2, w2, b2)
    jax.block_until_ready(out2)
    ref2 = _layernorm_ref(x2, w2, b2)
    assert jnp.allclose(out2, ref2, atol=1e-4, rtol=1e-4), "row-path mismatch"

    print("KERNEL_OK")
</pallas_src>

<mosaic_0001>
module attributes {stable_mosaic.version = 11 : i64} {
  func.func @_layernorm_packed_kernel(%arg0: i32, %arg1: memref<8x128xf32, #tpu.memory_space<vmem>>, %arg2: memref<128x128xf32, #tpu.memory_space<vmem>>, %arg3: memref<1x128xf32, #tpu.memory_space<vmem>>, %arg4: memref<1x128xf32, #tpu.memory_space<vmem>>, %arg5: memref<8x128xf32, #tpu.memory_space<vmem>>) attributes {dimension_semantics = [#tpu.dimension_semantics<parallel>], iteration_bounds = array<i64: 2>, scalar_prefetch = 0 : i64, scratch_operands = 0 : i64, tpu.core_type = #tpu.core_type<tc>, window_params = [{transform_indices = @transform_0, window_bounds = array<i64: 8, 128>}, {pipeline_mode = #tpu.pipeline_mode<synchronous>, transform_indices = @transform_1, window_bounds = array<i64: 128, 128>}, {pipeline_mode = #tpu.pipeline_mode<synchronous>, transform_indices = @transform_2, window_bounds = array<i64: 1, 128>}, {pipeline_mode = #tpu.pipeline_mode<synchronous>, transform_indices = @transform_3, window_bounds = array<i64: 1, 128>}, {transform_indices = @transform_4, window_bounds = array<i64: 8, 128>}]} {
    %c0 = arith.constant 0 : index
    %c0_0 = arith.constant 0 : index
    %0 = vector.load %arg1[%c0, %c0_0] : memref<8x128xf32, #tpu.memory_space<vmem>>, vector<8x128xf32>
    %c0_1 = arith.constant 0 : index
    %c0_2 = arith.constant 0 : index
    %1 = vector.load %arg2[%c0_1, %c0_2] : memref<128x128xf32, #tpu.memory_space<vmem>>, vector<128x128xf32>
    %2 = arith.truncf %0 : vector<8x128xf32> to vector<8x128xbf16>
    %3 = arith.extf %2 : vector<8x128xbf16> to vector<8x128xf32>
    %4 = arith.subf %0, %3 : vector<8x128xf32>
    %cst = arith.constant dense<0.000000e+00> : vector<8x128xf32>
    %5 = tpu.matmul %3, %1, %cst {dimension_numbers = #tpu.dot_dimension_numbers<[1], [0], [0], [1], [0, 0, 1, 1], [], []>} : vector<8x128xf32>, vector<128x128xf32>, vector<8x128xf32> -> vector<8x128xf32>
    %cst_3 = arith.constant dense<0.000000e+00> : vector<8x128xf32>
    %6 = tpu.matmul %4, %1, %cst_3 {dimension_numbers = #tpu.dot_dimension_numbers<[1], [0], [0], [1], [0, 0, 1, 1], [], []>} : vector<8x128xf32>, vector<128x128xf32>, vector<8x128xf32> -> vector<8x128xf32>
    %7 = arith.addf %5, %6 : vector<8x128xf32>
    %cst_4 = arith.constant 3.125000e-02 : f32
    %8 = vector.broadcast %cst_4 : f32 to vector<8x128xf32>
    %9 = arith.mulf %7, %8 : vector<8x128xf32>
    %10 = arith.mulf %0, %0 : vector<8x128xf32>
    %11 = arith.truncf %10 : vector<8x128xf32> to vector<8x128xbf16>
    %12 = arith.extf %11 : vector<8x128xbf16> to vector<8x128xf32>
    %13 = arith.subf %10, %12 : vector<8x128xf32>
    %cst_5 = arith.constant dense<0.000000e+00> : vector<8x128xf32>
    %14 = tpu.matmul %12, %1, %cst_5 {dimension_numbers = #tpu.dot_dimension_numbers<[1], [0], [0], [1], [0, 0, 1, 1], [], []>} : vector<8x128xf32>, vector<128x128xf32>, vector<8x128xf32> -> vector<8x128xf32>
    %cst_6 = arith.constant dense<0.000000e+00> : vector<8x128xf32>
    %15 = tpu.matmul %13, %1, %cst_6 {dimension_numbers = #tpu.dot_dimension_numbers<[1], [0], [0], [1], [0, 0, 1, 1], [], []>} : vector<8x128xf32>, vector<128x128xf32>, vector<8x128xf32> -> vector<8x128xf32>
    %16 = arith.addf %14, %15 : vector<8x128xf32>
    %cst_7 = arith.constant 3.125000e-02 : f32
    %17 = vector.broadcast %cst_7 : f32 to vector<8x128xf32>
    %18 = arith.mulf %16, %17 : vector<8x128xf32>
    %19 = arith.mulf %9, %9 : vector<8x128xf32>
    %20 = arith.subf %18, %19 : vector<8x128xf32>
    %cst_8 = arith.constant 0.000000e+00 : f32
    %21 = vector.broadcast %cst_8 : f32 to vector<8x128xf32>
    %22 = arith.maximumf %20, %21 : vector<8x128xf32>
    %23 = arith.subf %0, %9 : vector<8x128xf32>
    %cst_9 = arith.constant 9.99999974E-6 : f32
    %24 = vector.broadcast %cst_9 : f32 to vector<8x128xf32>
    %25 = arith.addf %22, %24 : vector<8x128xf32>
    %26 = math.rsqrt %25 : vector<8x128xf32>
    %27 = arith.mulf %23, %26 : vector<8x128xf32>
    %c0_10 = arith.constant 0 : index
    %c0_11 = arith.constant 0 : index
    %28 = vector.load %arg3[%c0_10, %c0_11] : memref<1x128xf32, #tpu.memory_space<vmem>>, vector<1x128xf32>
    %29 = vector.broadcast %28 : vector<1x128xf32> to vector<8x128xf32>
    %30 = arith.mulf %27, %29 : vector<8x128xf32>
    %c0_12 = arith.constant 0 : index
    %c0_13 = arith.constant 0 : index
    %31 = vector.load %arg4[%c0_12, %c0_13] : memref<1x128xf32, #tpu.memory_space<vmem>>, vector<1x128xf32>
    %32 = vector.broadcast %31 : vector<1x128xf32> to vector<8x128xf32>
    %33 = arith.addf %30, %32 : vector<8x128xf32>
    %c0_14 = arith.constant 0 : index
    %c0_15 = arith.constant 0 : index
    %34 = vector.load %arg5[%c0_14, %c0_15] : memref<8x128xf32, #tpu.memory_space<vmem>>, vector<8x128xf32>
    tpu.vector_store %arg5[%c0_14, %c0_15], %33 {strides = array<i32>} : memref<8x128xf32, #tpu.memory_space<vmem>>, vector<8x128xf32>,
    return
  }
  func.func @transform_0(%arg0: i32) -> (i32, i32) {
    %c0_i32 = arith.constant 0 : i32
    %c0_i32_0 = arith.constant 0 : i32
    return %arg0, %c0_i32 : i32, i32
  }
  func.func @transform_1(%arg0: i32) -> (i32, i32) {
    %c0_i32 = arith.constant 0 : i32
    %c0_i32_0 = arith.constant 0 : i32
    %c0_i32_1 = arith.constant 0 : i32
    return %c0_i32, %c0_i32_0 : i32, i32
  }
  func.func @transform_2(%arg0: i32) -> (i32, i32) {
    %c0_i32 = arith.constant 0 : i32
    %c0_i32_0 = arith.constant 0 : i32
    %c0_i32_1 = arith.constant 0 : i32
    return %c0_i32, %c0_i32_0 : i32, i32
  }
  func.func @transform_3(%arg0: i32) -> (i32, i32) {
    %c0_i32 = arith.constant 0 : i32
    %c0_i32_0 = arith.constant 0 : i32
    %c0_i32_1 = arith.constant 0 : i32
    return %c0_i32, %c0_i32_0 : i32, i32
  }
  func.func @transform_4(%arg0: i32) -> (i32, i32) {
    %c0_i32 = arith.constant 0 : i32
    %c0_i32_0 = arith.constant 0 : i32
    return %arg0, %c0_i32 : i32, i32
  }
}

</mosaic_0001>

<bundles_post_ra>
// kernel: tile.13
= control target key start
LH: loop header
LB: loop body
LE: loop exit
PB: predicated region body
PF: predicated region fallthrough
CT: control target
= control target key end

     0   :  { %s22_s0 = inlined_call_operand.vmem [shape: f32[32], index: 0, kind: input, shape index: {}]   ;;  %s23_s1 = inlined_call_operand.vmem [shape: f32[4,32], index: 1, kind: output, shape index: {}]  }
   0x1   :  { %v4_v0 = vld [vmem:[%s22_s0] ss:$0 sm:$0xff] }
   0x2   :  { %5 = vst [vmem:[%s23_s1] sm:$0xf] %v4_v0 }

// kernel: tile.14
= control target key start
LH: loop header
LB: loop body
LE: loop exit
PB: predicated region body
PF: predicated region fallthrough
CT: control target
= control target key end

     0   :  { %vm7_vm0 = vcmask 261120   ;;  %s37_s8 = smov 32   ;;  %s38_s9 = smov 64   ;;  %vm13_vm1 = vcmask 1048320   ;;  %vm19_vm2 = vcmask 785920   ;;  %vm25_vm3 = vcmask 523520   ;;  %s55_s0 = inlined_call_operand.vmem [shape: f32[4,32], index: 0, kind: input, shape index: {}]   ;;  %s56_s1 = inlined_call_operand.vmem [shape: f32[1,128], index: 1, kind: output, shape index: {}]  }
   0x1   :  { %v4_v0 = vld [vmem:[%s55_s0] sm:$0xf]  ;;  %s36_s0 = smov 96  }
   0x2   :  { %5 = vst [vmem:[#allocation1] sm:$0xf] %v4_v0 }
   0x9   :  { %v10_v1 = vld [vmem:[#allocation1 + $0x3] sm:$0x1]   ;;  %v22_v2 = vld [vmem:[#allocation1 + $0x1] sm:$0x1]   ;;  %v6_v3 = vld [vmem:[#allocation1] sm:$0x1]  }
   0xa   :  { %11 = vrot.lane.b32.xlu0 %v10_v1, %s36_s0  ;;  %23 = vrot.lane.b32.xlu1 %v22_v2, %s37_s8  ;;  %v16_v4 = vld [vmem:[#allocation1 + $0x2] sm:$0x1]   ;;  %8 = vst.msk [vmem:[#allocation0] sm:$0x1] %vm7_vm0, %v6_v3  }
   0xe   :  { %17 = vrot.lane.b32.xlu0 %v16_v4, %s38_s9 }
  0x7c   :  { %v12_v5 = vpop.permute.xlu0 %11   ;;  %v24_v6 = vpop.permute.xlu1 %23  }
  0x7d   :  { %14 = vst.msk [vmem:[#allocation0] sm:$0x1] %vm13_vm1, %v12_v5  }
  0x80   :  { %v18_v7 = vpop.permute.xlu0 %17  }
  0x81   :  { %20 = vst.msk [vmem:[#allocation0] sm:$0x1] %vm19_vm2, %v18_v7  }
  0x82   :  { %26 = vst.msk [vmem:[#allocation0] sm:$0x1] %vm25_vm3, %v24_v6  }
  0x89   :  { %v30_v8 = vld [vmem:[#allocation0] sm:$0x1] }
  0x8a   :  { %32 = vst [vmem:[%s56_s1] sm:$0x1] %v30_v8 }

// kernel: identity_norm_layer.1
= control target key start
LH: loop header
LB: loop body
LE: loop exit
PB: predicated region body
PF: predicated region fallthrough
CT: control target
= control target key end

     0   :  { %s944_s15 = smov 0   ;;  %s1088_s0 = inlined_call_operand.vmem [shape: f32[16,128], index: 0, kind: input, shape index: {}]   ;;  %s1089_s1 = inlined_call_operand.vmem [shape: f32[128,128], index: 1, kind: input, shape index: {}]   ;;  %s1090_s2 = inlined_call_operand.vmem [shape: f32[1,128], index: 2, kind: input, shape index: {}]   ;;  %s1091_s3 = inlined_call_operand.vmem [shape: f32[1,128], index: 3, kind: input, shape index: {}]   ;;  %s1092_s4 = inlined_call_operand.vmem [shape: f32[16,128], index: 4, kind: output, shape index: {}]  }
   0x1 LB: > { %s576_s16 = sadd.s32 4294967295, %s914_s15   ;;  %p580_p0 = scmp.ge.s32.totalorder %s914_s15, 1  ;;  %s914_s15 = sphi %s944_s15, %s14_s15  }
   0x2   : > { %p161_p1 = scmp.lt.s32.totalorder %s914_s15, 3 }
   0x4   : > { %p162_p2 = pnand %p580_p0, %p161_p1 }
   0x5   : > { %v194_v0 = vld [vmem:[%s1089_s1] sm:$0xff] (!%p162_p2)  ;;  %v195_v1 = vld [vmem:[%s1089_s1 + $0x8] sm:$0xff] (!%p162_p2)  ;;  %v196_v2 = vld [vmem:[%s1089_s1 + $0x10] sm:$0xff] (!%p162_p2)  ;;  %v916_v3 = vmov (!%p162_p2), 0.0|0.0   ;;  %p185_p3 = scmp.lt.s32.totalorder (!%p162_p2), %s576_s16, 1  ;;  %vm917_vm0 = vmmov (!%p162_p2), 0  }
   0x6   : > { %165 = sbr.rel (%p162_p2) target bundleno = 311 (0x137), region = 36  ;;  %795 = vmatprep.subr.bf16.mxu0 (!%p162_p2), %v916_v3  ;;  %843 = vmatprep.subr.bf16.mxu1 (!%p162_p2), %v916_v3  ;;  %v963_v4 = vpack.c.bf16 (!%p162_p2), %v195_v1, %v194_v0  ;;  %v197_v5 = vld [vmem:[%s1089_s1 + $0x18] sm:$0xff] (!%p162_p2)  ;;  %v918_v6 = vmov (!%p162_p2), 0.0   ;;  %v198_v8 = vld [vmem:[%s1089_s1 + $0x20] sm:$0xff] (!%p162_p2)  ;;  %v199_v9 = vld [vmem:[%s1089_s1 + $0x28] sm:$0xff] (!%p162_p2) }
   0x7   : > { %687 = vmatprep.mubr.msk.f32.mxu0 (!%p162_p2), %vm917_vm0, %v918_v6  ;;  %757 = vmatprep.mubr.msk.f32.mxu1 (!%p162_p2), %vm917_vm0, %v918_v6  ;;  %v974_v7 = vpack.c.bf16 (!%p162_p2), %v197_v5, %v196_v2  ;;  %v988_v10 = vpack.c.bf16 (!%p162_p2), %v199_v9, %v198_v8  ;;  %v200_v11 = vld [vmem:[%s1089_s1 + $0x30] sm:$0xff] (!%p162_p2)  ;;  %v201_v12 = vld [vmem:[%s1089_s1 + $0x38] sm:$0xff] (!%p162_p2)  ;;  %v202_v14 = vld [vmem:[%s1089_s1 + $0x40] sm:$0xff] (!%p162_p2) }
   0x8   : > { %797 = vmatpush3.bf16.msra.mxu0 (!%p162_p2), %v963_v4  ;;  %845 = vmatpush3.bf16.msra.mxu1 (!%p162_p2), %v963_v4  ;;  %v805_v13 = vpack.c.bf16 (!%p162_p2), %v201_v12, %v200_v11  ;;  %v203_v15 = vld [vmem:[%s1089_s1 + $0x48] sm:$0xff] (!%p162_p2)  ;;  %v204_v18 = vld [vmem:[%s1089_s1 + $0x50] sm:$0xff] (!%p162_p2)  ;;  %v205_v19 = vld [vmem:[%s1089_s1 + $0x58] sm:$0xff] (!%p162_p2) }
   0x9   : > { %798 = vmatprep.subr.bf16.mxu0 (!%p162_p2), %v916_v3  ;;  %846 = vmatprep.subr.bf16.mxu1 (!%p162_p2), %v916_v3  ;;  %v808_v16 = vpack.c.bf16 (!%p162_p2), %v203_v15, %v202_v14  ;;  %v811_v21 = vpack.c.bf16 (!%p162_p2), %v205_v19, %v204_v18  ;;  %v206_v22 = vld [vmem:[%s1089_s1 + $0x60] sm:$0xff] (!%p162_p2)  ;;  %v207_v23 = vld [vmem:[%s1089_s1 + $0x68] sm:$0xff] (!%p162_p2)  ;;  %v208_v27 = vld [vmem:[%s1089_s1 + $0x70] sm:$0xff] (!%p162_p2) }
   0xa   : > { %v814_v26 = vpack.c.bf16 (!%p162_p2), %v207_v23, %v206_v22  ;;  %v209_v28 = vld [vmem:[%s1089_s1 + $0x78] sm:$0xff] (!%p162_p2)  ;;  %v583_v46 = vld [vmem:[%s1090_s2] ss:$0 sm:$0xff] (!%p162_p2) }
   0xb   : > { %v817_v31 = vpack.c.bf16 (!%p162_p2), %v209_v28, %v208_v27  ;;  %v584_v48 = vld [vmem:[%s1091_s3] ss:$0 sm:$0xff] (!%p162_p2) }
   0xc   : > { %800 = vmatpush3.bf16.msra.mxu0 (!%p162_p2), %v974_v7  ;;  %848 = vmatpush3.bf16.msra.mxu1 (!%p162_p2), %v974_v7 }
   0xd   : > { %s1094_s16 = smov (!%p185_p3, %s576_s16), 1  ;;  %801 = vmatprep.subr.bf16.mxu0 %v916_v3  ;;  %849 = vmatprep.subr.bf16.mxu1 %v916_v3 }
   0xe   : > { %s581_s7 = sshll.u32 %s1094_s16, 3 }
   0xf   : > { %s188_s14 = scalar_lea.vmem %s1088_s0, %s581_s7  ;;  %s192_s10 = scalar_lea.vmem %s1092_s4, %s581_s7 }
  0x10   : > { %803 = vmatpush3.bf16.msra.mxu0 %v988_v10  ;;  %851 = vmatpush3.bf16.msra.mxu1 %v988_v10  ;;  %v1014_v17 = vld [vmem:[%s188_s14] sm:$0xff] }
  0x11   : > { %804 = vmatprep.subr.bf16.mxu0 %v916_v3  ;;  %852 = vmatprep.subr.bf16.mxu1 %v916_v3  ;;  %v354_v20 = vmul.f32 %v1014_v17, %v1014_v17  ;;  %v210_v24 = vpack.c.bf16 %v1014_v17, %v1014_v17 }
  0x13   : > { %v355_v25 = vpack.c.bf16 %v354_v20, %v354_v20  ;;  %v211_v29 = vunpack.c.l.bf16 %v210_v24 }
  0x14   : > { %806 = vmatpush3.bf16.msra.mxu0 %v805_v13  ;;  %854 = vmatpush3.bf16.msra.mxu1 %v805_v13 }
  0x15   : > { %807 = vmatprep.subr.bf16.mxu0 %v916_v3  ;;  %855 = vmatprep.subr.bf16.mxu1 %v916_v3  ;;  %v356_v30 = vunpack.c.l.bf16 %v355_v25  ;;  %v212_v32 = vsub.f32 %v1014_v17, %v211_v29 }
  0x17   : > { %v357_v33 = vsub.f32 %v354_v20, %v356_v30 }
  0x18   : > { %809 = vmatpush3.bf16.msra.mxu0 %v808_v16  ;;  %857 = vmatpush3.bf16.msra.mxu1 %v808_v16 }
  0x19   : > { %810 = vmatprep.subr.bf16.mxu0 %v916_v3  ;;  %858 = vmatprep.subr.bf16.mxu1 %v916_v3 }
  0x1c   : > { %812 = vmatpush3.bf16.msra.mxu0 %v811_v21  ;;  %860 = vmatpush3.bf16.msra.mxu1 %v811_v21 }
  0x1d   : > { %813 = vmatprep.subr.bf16.mxu0 %v916_v3  ;;  %861 = vmatprep.subr.bf16.mxu1 %v916_v3 }
  0x20   : > { %815 = vmatpush3.bf16.msra.mxu0 %v814_v26  ;;  %863 = vmatpush3.bf16.msra.mxu1 %v814_v26 }
  0x21   : > { %816 = vmatprep.subr.bf16.mxu0 %v916_v3  ;;  %864 = vmatprep.subr.bf16.mxu1 %v916_v3 }
  0x24   : > { %818 = vmatpush3.bf16.msra.mxu0 %v817_v31  ;;  %866 = vmatpush3.bf16.msra.mxu1 %v817_v31 }
  0x25   : > { %819 = vmatprep.subr.bf16.mxu0 %v916_v3  ;;  %867 = vmatprep.subr.bf16.mxu1 %v916_v3 }
  0x27   : > { %688 = vmatmul.mubr.f32.vlgmr.msra.gmra.mrb[0].mxu0 %v212_v32  ;;  %758 = vmatmul.mubr.f32.vlgmr.msra.gmra.mrb[0].mxu1 %v357_v33 }
  0x28   : > { %821 = vmatpush3.bf16.msra.mxu0 %v963_v4  ;;  %869 = vmatpush3.bf16.msra.mxu1 %v963_v4 }
  0x29   : > { %822 = vmatprep.subr.bf16.mxu0 %v916_v3  ;;  %870 = vmatprep.subr.bf16.mxu1 %v916_v3 }
  0x2a   : > { %722 = vmatprep.mubr.msk.f32.mxu0 %vm917_vm0, %v918_v6  ;;  %792 = vmatprep.mubr.msk.f32.mxu1 %vm917_vm0, %v918_v6 }
  0x2c   : > { %824 = vmatpush3.bf16.msra.mxu0 %v974_v7  ;;  %872 = vmatpush3.bf16.msra.mxu1 %v974_v7 }
  0x2d   : > { %825 = vmatprep.subr.bf16.mxu0 %v916_v3  ;;  %873 = vmatprep.subr.bf16.mxu1 %v916_v3 }
  0x30   : > { %827 = vmatpush3.bf16.msra.mxu0 %v988_v10  ;;  %875 = vmatpush3.bf16.msra.mxu1 %v988_v10 }
  0x31   : > { %828 = vmatprep.subr.bf16.mxu0 %v916_v3  ;;  %876 = vmatprep.subr.bf16.mxu1 %v916_v3 }
  0x34   : > { %830 = vmatpush3.bf16.msra.mxu0 %v805_v13  ;;  %878 = vmatpush3.bf16.msra.mxu1 %v805_v13 }
  0x35   : > { %831 = vmatprep.subr.bf16.mxu0 %v916_v3  ;;  %879 = vmatprep.subr.bf16.mxu1 %v916_v3 }
  0x38   : > { %833 = vmatpush3.bf16.msra.mxu0 %v808_v16  ;;  %881 = vmatpush3.bf16.msra.mxu1 %v808_v16 }
  0x39   : > { %834 = vmatprep.subr.bf16.mxu0 %v916_v3  ;;  %882 = vmatprep.subr.bf16.mxu1 %v916_v3 }
  0x3c   : > { %836 = vmatpush3.bf16.msra.mxu0 %v811_v21  ;;  %884 = vmatpush3.bf16.msra.mxu1 %v811_v21 }
  0x3d   : > { %837 = vmatprep.subr.bf16.mxu0 %v916_v3  ;;  %885 = vmatprep.subr.bf16.mxu1 %v916_v3 }
  0x40   : > { %839 = vmatpush3.bf16.msra.mxu0 %v814_v26  ;;  %887 = vmatpush3.bf16.msra.mxu1 %v814_v26 }
  0x41   : > { %840 = vmatprep.subr.bf16.mxu0 %v916_v3  ;;  %888 = vmatprep.subr.bf16.mxu1 %v916_v3 }
  0x44   : > { %842 = vmatpush3.bf16.msra.mxu0 %v817_v31  ;;  %890 = vmatpush3.bf16.msra.mxu1 %v817_v31 }
  0x47   : > { %723 = vmatmul.mubr.f32.vlgmr.msra.gmra.mrb[0].mxu0 %v211_v29  ;;  %793 = vmatmul.mubr.f32.vlgmr.msra.gmra.mrb[0].mxu1 %v356_v30 }
 0x11a   : > { %v349_v34 = vpop.f32.mrb[0].mxu0  ;;  %v494_v35 = vpop.f32.mrb[0].mxu1 }
 0x11b   : > { %v353_v36 = vmul.f32 0.03125, %v349_v34  ;;  %v724_v37 = vpop.f32.mrb[1].mxu0  ;;  %v794_v38 = vpop.f32.mrb[1].mxu1  ;;  %v498_v40 = vmul.f32 0.03125, %v494_v35 }
 0x11d   : > { %v499_v39 = vmul.f32 %v353_v36, %v353_v36  ;;  %v502_v44 = vsub.f32 %v1014_v17, %v353_v36 }
 0x11f   : > { %v500_v41 = vsub.f32 %v498_v40, %v499_v39 }
 0x121   : > { %v501_v42 = vmax.f32 %v500_v41, 0.0 }
 0x123   : > { %v503_v43 = vadd.f32 1e-05, %v501_v42 }
 0x125   : > { %906 = vrsqrt.f32 %v503_v43 }
 0x12f   : > { %v907_v45 = vpop.eup %906 }
 0x130   : > { %v505_v47 = vmul.f32 %v907_v45, %v502_v44 }
 0x132   : > { %v513_v49 = vmul.f32 %v583_v46, %v505_v47 }
 0x134   : > { %v521_v50 = vadd.f32 %v584_v48, %v513_v49 }
 0x136   : > { %522 = vst [vmem:[%s192_s10] sm:$0xff] %v521_v50 }
 0x137 PF: > { %s14_s15 = sadd.s32 1, %s914_s15  }
 0x138   : > { %p11_p4 = scmp.ge.s32.totalorder %s14_s15, 4  }
 0x13a   :  { %13 = sbr.rel (!%p11_p4) target bundleno = 1 (0x1), region = 66 }

</bundles_post_ra>
